<compile_context>
chip_gen: v5e
topology: v5e:2x2
jax: 0.10.0
libtpu: 0.0.40
codegen_flags: <defaults>
</compile_context>

<pallas_src>
import functools

import jax
import jax.numpy as jnp
from jax import lax
from jax.experimental import pallas as pl
from jax.experimental.pallas import tpu as pltpu

EPS = 1e-5  # nn.LayerNorm default eps


def _layernorm(x, g, b):
    mu = jnp.mean(x, axis=-1, keepdims=True)
    var = jnp.mean(jnp.square(x - mu), axis=-1, keepdims=True)
    return (x - mu) * lax.rsqrt(var + EPS) * g + b


def _gelu_exact(x):
    # nn.GELU() default: exact erf formulation.
    return 0.5 * x * (1.0 + lax.erf(x * 0.7071067811865476))


def _vmem_limit_bytes():
    # Budget scoped VMEM explicitly (default scoped limit is well below the
    # physical 128 MiB on v5e/v6e and 64 MiB on v7x).
    try:
        cap = pltpu.get_tpu_info().vmem_capacity_bytes
        return min(int(cap * 0.85), 100 * 1024 * 1024)
    except Exception:  # pragma: no cover - older jax / CPU tracing fallback
        return 64 * 1024 * 1024


def _pick_batch_block(batch, desired):
    """Largest divisor of `batch` <= desired that keeps >= 2 grid steps on the
    parallel batch axis (so both v7x TensorCores stay busy)."""
    bb = 1
    for cand in range(2, min(desired, batch) + 1):
        if batch % cand == 0 and batch // cand >= 2:
            bb = cand
    return bb


# ---------------- kernel 1: tiled linear (patch embedding) ----------------
def linear_kernel(x_ref, w_ref, b_ref, o_ref):
    # x and w are bf16; accumulate in f32 on the MXU, add f32 bias.
    o_ref[...] = (
        jnp.dot(x_ref[...], w_ref[...], preferred_element_type=jnp.float32)
        + b_ref[...]
    )


def pallas_linear(x, w, b, *, tm=512):
    # x: (M, K) bf16, w: (K, N) bf16, b: (1, N) f32 -> (M, N) f32.
    M, K = x.shape
    N = w.shape[1]
    tm = min(tm, M)
    Mp = ((M + tm - 1) // tm) * tm
    if Mp != M:
        x = jnp.pad(x, ((0, Mp - M), (0, 0)))
    out = pl.pallas_call(
        linear_kernel,
        out_shape=jax.ShapeDtypeStruct((Mp, N), jnp.float32),
        grid=(Mp // tm,),
        in_specs=[
            pl.BlockSpec((tm, K), lambda i: (i, 0)),
            pl.BlockSpec((K, N), lambda i: (0, 0)),
            pl.BlockSpec((1, N), lambda i: (0, 0)),
        ],
        out_specs=pl.BlockSpec((tm, N), lambda i: (i, 0)),
        compiler_params=pltpu.CompilerParams(
            dimension_semantics=("parallel",)),
    )(x, w, b)
    return out[:M]


# ------------- kernel 2: full transformer (all layers, one call) -------------
def transformer_kernel(x_ref, ln1g_ref, ln1b_ref, wqkv_ref, wo_ref, bo_ref,
                       ln2g_ref, ln2b_ref, w1_ref, b1_ref, w2_ref, b2_ref,
                       o_ref, *, heads, dim_head, block_b):
    layer = pl.program_id(1)
    inner = heads * dim_head

    # Layer 0: initialize the resident carry (output block) from the input.
    @pl.when(layer == 0)
    def _():
        o_ref[...] = x_ref[...]

    # Per-layer weights / scale-shift vectors are loaded once per grid step
    # and reused by every image in the batch block (weight-DMA amortization).
    g1, be1 = ln1g_ref[...], ln1b_ref[...]
    g2, be2 = ln2g_ref[...], ln2b_ref[...]
    wqkv = wqkv_ref[...]                               # bf16 (D, 3*inner)
    bo = bo_ref[...]
    w1, b1 = w1_ref[...], b1_ref[...]
    w2, b2 = w2_ref[...], b2_ref[...]

    # Small static unroll over the batch block (block_b <= 4).
    for i in range(block_b):
        x = o_ref[i]                                   # (N, D) f32 carry

        # --- PreNorm + multi-head self-attention ---
        xn = _layernorm(x, g1, be1)
        # One wide fused QKV matmul (scale pre-folded into the q columns);
        # keep the result bf16 so per-head slices don't re-spill f32.
        qkv = jnp.dot(xn.astype(jnp.bfloat16), wqkv,
                      preferred_element_type=jnp.float32
                      ).astype(jnp.bfloat16)           # (N, 3*inner) bf16

        # Accumulate residual + bias + per-head output projections in
        # registers; no lane-minor concat, no VMEM scratch.
        attn_out = x + bo
        for h in range(heads):                         # static unroll
            q = qkv[:, h * dim_head:(h + 1) * dim_head]
            k = qkv[:, inner + h * dim_head:inner + (h + 1) * dim_head]
            v = qkv[:, 2 * inner + h * dim_head:2 * inner + (h + 1) * dim_head]
            # q @ k^T without an explicit transpose
            dots = lax.dot_general(q, k, (((1,), (1,)), ((), ())),
                                   preferred_element_type=jnp.float32)
            dots = dots - jnp.max(dots, axis=-1, keepdims=True)
            e = jnp.exp(dots)
            attn = e * pl.reciprocal(jnp.sum(e, axis=-1, keepdims=True),
                                     approx=True)
            ho = jnp.dot(attn.astype(jnp.bfloat16), v,
                         preferred_element_type=jnp.float32)   # (N, dh) f32
            attn_out = attn_out + jnp.dot(
                ho.astype(jnp.bfloat16),
                wo_ref[pl.ds(h * dim_head, dim_head), :],
                preferred_element_type=jnp.float32)
        x = attn_out                                   # residual included

        # --- PreNorm + feed-forward ---
        # TODO(synk): for ViT-L/H-class configs on v7x (64 MiB VMEM), tile
        # w1/w2 along mlp_dim (inner emit_pipeline) instead of keeping the
        # full MLP blocks resident; unnecessary on 128 MiB v5e/v6e.
        xn2 = _layernorm(x, g2, be2)
        h1 = jnp.dot(xn2.astype(jnp.bfloat16), w1,
                     preferred_element_type=jnp.float32) + b1
        h1 = _gelu_exact(h1)
        h2 = jnp.dot(h1.astype(jnp.bfloat16), w2,
                     preferred_element_type=jnp.float32) + b2
        o_ref[i] = x + h2                              # residual -> carry


def transformer(x, p, *, heads, dim_head, depth, batch_block=4):
    B, N, D = x.shape
    inner = heads * dim_head
    mlp = p["w1"].shape[-1]
    bb = _pick_batch_block(B, batch_block)

    def wspec(shape):
        # Per-layer weight/bias block, selected by the depth grid coordinate.
        return pl.BlockSpec((pl.Squeezed(),) + shape,
                            lambda b, l: (l,) + (0,) * len(shape))

    # Activation block covers bb images; its block index is constant across
    # the depth axis so it is fetched once per batch block and the output
    # block stays resident as the layer-to-layer carry.
    x_spec = pl.BlockSpec((bb, N, D), lambda b, l: (b, 0, 0))
    o_spec = pl.BlockSpec((bb, N, D), lambda b, l: (b, 0, 0))

    kernel = functools.partial(transformer_kernel, heads=heads,
                               dim_head=dim_head, block_b=bb)
    # TODO(synk): on v7x, add an fp8 (e4m3 + per-channel scale) weight path
    # for wqkv/wo/w1/w2 to halve weight DMA and double-buffer footprint.
    return pl.pallas_call(
        kernel,
        out_shape=jax.ShapeDtypeStruct((B, N, D), jnp.float32),
        grid=(B // bb, depth),
        in_specs=[
            x_spec,
            wspec((1, D)), wspec((1, D)),            # ln1 gamma/beta
            wspec((D, 3 * inner)),                   # fused qkv (bf16)
            wspec((inner, D)), wspec((1, D)),        # wo (bf16), bo
            wspec((1, D)), wspec((1, D)),            # ln2 gamma/beta
            wspec((D, mlp)), wspec((1, mlp)),        # w1 (bf16), b1
            wspec((mlp, D)), wspec((1, D)),          # w2 (bf16), b2
        ],
        out_specs=o_spec,
        compiler_params=pltpu.CompilerParams(
            dimension_semantics=("parallel", "arbitrary"),
            vmem_limit_bytes=_vmem_limit_bytes()),
    )(x, p["ln1g"], p["ln1b"], p["wqkv"], p["wo"], p["bo"],
      p["ln2g"], p["ln2b"], p["w1"], p["b1"], p["w2"], p["b2"])


# ---------------- kernel 3: mlp head (LayerNorm + Linear) ----------------
def head_kernel(x_ref, g_ref, b_ref, w_ref, bias_ref, o_ref):
    xn = _layernorm(x_ref[...], g_ref[...], b_ref[...])
    o_ref[...] = (
        jnp.dot(xn.astype(jnp.bfloat16), w_ref[...],
                preferred_element_type=jnp.float32)
        + bias_ref[...]
    )


def mlp_head(x, g, b, w, bias):
    # TODO(synk): for large batches / num_classes, pad the output to a
    # 128-lane multiple and tile over rows (lane-dense unmasked stores).
    B = x.shape[0]
    C = w.shape[1]
    return pl.pallas_call(
        head_kernel,
        out_shape=jax.ShapeDtypeStruct((B, C), jnp.float32),
    )(x, g, b, w, bias)


# ---------------------------- full ViT forward ----------------------------
def vit_forward(img, p, *, patch_size, heads, dim_head, pool="cls",
                batch_block=4):
    B, C, H, W = img.shape
    ph = pw = patch_size
    h, w = H // ph, W // pw
    n = h * w
    patch_dim = C * ph * pw
    D = p["patch_w"].shape[1]
    depth = p["depth"]

    # rearrange 'b c (h p1) (w p2) -> b (h w) (p1 p2 c)'  (glue)
    x = img.reshape(B, C, h, ph, w, pw).transpose(0, 2, 4, 3, 5, 1)
    x = x.reshape(B, n, patch_dim)

    # patch-embedding Linear (Pallas kernel, tiled over rows); cast the
    # HBM-dominant activation stream to bf16 before the call.
    x = pallas_linear(x.reshape(B * n, patch_dim).astype(jnp.bfloat16),
                      p["patch_w"], p["patch_b"]).reshape(B, n, D)

    # cls token + positional embedding (glue); dropout(p=0.0) is identity
    cls = jnp.broadcast_to(p["cls_token"], (B, 1, D))
    x = jnp.concatenate([cls, x], axis=1)
    x = x + p["pos_embedding"][:, :n + 1]

    # transformer: all layers fused into a single Pallas call, batch-blocked
    x = transformer(x, p, heads=heads, dim_head=dim_head, depth=depth,
                    batch_block=batch_block)

    x = jnp.mean(x, axis=1) if pool == "mean" else x[:, 0]

    # mlp_head: LayerNorm + Linear (Pallas kernel)
    return mlp_head(x, p["head_ln_g"], p["head_ln_b"],
                    p["head_w"], p["head_b"])


# ---------------------------- parameters ----------------------------
def init_params(key, *, image_size, patch_size, num_classes, dim, depth,
                heads, dim_head, mlp_dim, channels):
    n_patches = (image_size // patch_size) ** 2
    patch_dim = channels * patch_size * patch_size
    inner = heads * dim_head
    keys = jax.random.split(key, 4 + depth)

    def nrm(k, shape, s=0.02):
        return jax.random.normal(k, shape, jnp.float32) * s

    params = {
        "patch_w": nrm(keys[0], (patch_dim, dim)),
        "patch_b": jnp.zeros((1, dim), jnp.float32),
        "pos_embedding": jax.random.normal(keys[1], (1, n_patches + 1, dim),
                                           jnp.float32),
        "cls_token": jax.random.normal(keys[2], (1, 1, dim), jnp.float32),
        "head_ln_g": jnp.ones((1, dim), jnp.float32),
        "head_ln_b": jnp.zeros((1, dim), jnp.float32),
        "head_w": nrm(keys[3], (dim, num_classes)),
        "head_b": jnp.zeros((1, num_classes), jnp.float32),
        "layers": [],
    }
    for l in range(depth):
        lk = jax.random.split(keys[4 + l], 4)
        params["layers"].append({
            "ln1g": jnp.ones((1, dim), jnp.float32),
            "ln1b": jnp.zeros((1, dim), jnp.float32),
            "wqkv": nrm(lk[0], (dim, 3 * inner)),
            "wo": nrm(lk[1], (inner, dim)),
            "bo": jnp.zeros((1, dim), jnp.float32),
            "ln2g": jnp.ones((1, dim), jnp.float32),
            "ln2b": jnp.zeros((1, dim), jnp.float32),
            "w1": nrm(lk[2], (dim, mlp_dim)),
            "b1": jnp.zeros((1, mlp_dim), jnp.float32),
            "w2": nrm(lk[3], (mlp_dim, dim)),
            "b2": jnp.zeros((1, dim), jnp.float32),
        })
    return params


def prepare_params(params, *, heads, dim_head):
    """Stack per-layer weights on a leading depth axis, fold the attention
    scale into the q columns of wqkv, and cast matmul weights to bf16
    (halves the layer-weight DMA bytes; accumulation stays f32)."""
    inner = heads * dim_head
    scale = dim_head ** -0.5
    layers = params["layers"]

    def stack(name):
        return jnp.stack([lp[name] for lp in layers], axis=0)

    wqkv = stack("wqkv")
    wqkv = wqkv.at[:, :, :inner].multiply(scale)   # fold scale into wq

    prepared = {
        "patch_w": params["patch_w"].astype(jnp.bfloat16),
        "patch_b": params["patch_b"],
        "pos_embedding": params["pos_embedding"],
        "cls_token": params["cls_token"],
        "head_ln_g": params["head_ln_g"],
        "head_ln_b": params["head_ln_b"],
        "head_w": params["head_w"].astype(jnp.bfloat16),
        "head_b": params["head_b"],
        "ln1g": stack("ln1g"), "ln1b": stack("ln1b"),
        "wqkv": wqkv.astype(jnp.bfloat16),
        "wo": stack("wo").astype(jnp.bfloat16),
        "bo": stack("bo"),
        "ln2g": stack("ln2g"), "ln2b": stack("ln2b"),
        "w1": stack("w1").astype(jnp.bfloat16),
        "b1": stack("b1"),
        "w2": stack("w2").astype(jnp.bfloat16),
        "b2": stack("b2"),
        "depth": len(layers),
    }
    return prepared


if __name__ == "__main__":
    # ViT(image_size=16, patch_size=4, num_classes=10, dim=32, depth=2,
    #     heads=4, mlp_dim=64, channels=4, dim_head=8, dropout=0.0)
    image_size, patch_size, channels = 16, 4, 4
    dim, depth, heads, dim_head, mlp_dim = 32, 2, 4, 8, 64
    num_classes = 10
    B = 4  # exercises the batch-blocked path (bb=2, parallel grid axis = 2)

    key = jax.random.PRNGKey(0)
    k_img, k_param = jax.random.split(key)
    img = jax.random.normal(k_img, (B, channels, image_size, image_size),
                            jnp.float32)
    raw_params = init_params(k_param, image_size=image_size,
                             patch_size=patch_size, num_classes=num_classes,
                             dim=dim, depth=depth, heads=heads,
                             dim_head=dim_head, mlp_dim=mlp_dim,
                             channels=channels)
    params = prepare_params(raw_params, heads=heads, dim_head=dim_head)

    out = vit_forward(img, params, patch_size=patch_size, heads=heads,
                      dim_head=dim_head, pool="cls", batch_block=4)
    out = jax.block_until_ready(out)
    assert out.shape == (B, num_classes), out.shape
    assert jnp.all(jnp.isfinite(out))
    print("KERNEL_OK")
</pallas_src>

<mosaic_0001>
module attributes {stable_mosaic.version = 11 : i64} {
  func.func @linear_kernel(%arg0: i32, %arg1: memref<64x64xbf16, #tpu.memory_space<vmem>>, %arg2: memref<64x32xbf16, #tpu.memory_space<vmem>>, %arg3: memref<1x32xf32, #tpu.memory_space<vmem>>, %arg4: memref<64x32xf32, #tpu.memory_space<vmem>>) attributes {dimension_semantics = [#tpu.dimension_semantics<parallel>], iteration_bounds = array<i64: 1>, scalar_prefetch = 0 : i64, scratch_operands = 0 : i64, tpu.core_type = #tpu.core_type<tc>, window_params = [{transform_indices = @transform_0, window_bounds = array<i64: 64, 64>}, {pipeline_mode = #tpu.pipeline_mode<synchronous>, transform_indices = @transform_1, window_bounds = array<i64: 64, 32>}, {pipeline_mode = #tpu.pipeline_mode<synchronous>, transform_indices = @transform_2, window_bounds = array<i64: 1, 32>}, {transform_indices = @transform_3, window_bounds = array<i64: 64, 32>}]} {
    %c0 = arith.constant 0 : index
    %c0_0 = arith.constant 0 : index
    %0 = vector.load %arg1[%c0, %c0_0] : memref<64x64xbf16, #tpu.memory_space<vmem>>, vector<64x64xbf16>
    %c0_1 = arith.constant 0 : index
    %c0_2 = arith.constant 0 : index
    %1 = vector.load %arg2[%c0_1, %c0_2] : memref<64x32xbf16, #tpu.memory_space<vmem>>, vector<64x32xbf16>
    %cst = arith.constant dense<0.000000e+00> : vector<64x32xf32>
    %2 = tpu.matmul %0, %1, %cst {dimension_numbers = #tpu.dot_dimension_numbers<[1], [0], [0], [1], [0, 0, 1, 1], [], []>} : vector<64x64xbf16>, vector<64x32xbf16>, vector<64x32xf32> -> vector<64x32xf32>
    %c0_3 = arith.constant 0 : index
    %c0_4 = arith.constant 0 : index
    %3 = vector.load %arg3[%c0_3, %c0_4] : memref<1x32xf32, #tpu.memory_space<vmem>>, vector<1x32xf32>
    %4 = vector.broadcast %3 : vector<1x32xf32> to vector<64x32xf32>
    %5 = arith.addf %2, %4 : vector<64x32xf32>
    %c0_5 = arith.constant 0 : index
    %c0_6 = arith.constant 0 : index
    %6 = vector.load %arg4[%c0_5, %c0_6] : memref<64x32xf32, #tpu.memory_space<vmem>>, vector<64x32xf32>
    tpu.vector_store %arg4[%c0_5, %c0_6], %5 {strides = array<i32>} : memref<64x32xf32, #tpu.memory_space<vmem>>, vector<64x32xf32>,
    return
  }
  func.func @transform_0(%arg0: i32) -> (i32, i32) {
    %c0_i32 = arith.constant 0 : i32
    %c0_i32_0 = arith.constant 0 : i32
    return %arg0, %c0_i32 : i32, i32
  }
  func.func @transform_1(%arg0: i32) -> (i32, i32) {
    %c0_i32 = arith.constant 0 : i32
    %c0_i32_0 = arith.constant 0 : i32
    %c0_i32_1 = arith.constant 0 : i32
    return %c0_i32, %c0_i32_0 : i32, i32
  }
  func.func @transform_2(%arg0: i32) -> (i32, i32) {
    %c0_i32 = arith.constant 0 : i32
    %c0_i32_0 = arith.constant 0 : i32
    %c0_i32_1 = arith.constant 0 : i32
    return %c0_i32, %c0_i32_0 : i32, i32
  }
  func.func @transform_3(%arg0: i32) -> (i32, i32) {
    %c0_i32 = arith.constant 0 : i32
    %c0_i32_0 = arith.constant 0 : i32
    return %arg0, %c0_i32 : i32, i32
  }
}

</mosaic_0001>

<bundles_post_ra>
// kernel: tpu_custom_call.1
= control target key start
LH: loop header
LB: loop body
LE: loop exit
PB: predicated region body
PF: predicated region fallthrough
CT: control target
= control target key end

     0   :  { %vm79_vm0 = vcmask 523264   ;;  %vm121_vm1 = vcmask 261120   ;;  %s270_s1 = inlined_call_operand.vmem [shape: bf16[64,32], index: 1, kind: input, shape index: {}]   ;;  %s271_s2 = inlined_call_operand.vmem [shape: f32[1,32], index: 2, kind: input, shape index: {}]   ;;  %s272_s0 = inlined_call_operand.vmem [shape: bf16[64,64], index: 0, kind: input, shape index: {}]   ;;  %s273_s3 = inlined_call_operand.vmem [shape: f32[64,32], index: 3, kind: output, shape index: {}]  }
   0x1   :  { %v177_v0 = vld [vmem:[%s270_s1 + $0x18] sm:$0xff]  ;;  %v176_v1 = vld [vmem:[%s270_s1 + $0x10] sm:$0xff]  ;;  %v175_v2 = vld [vmem:[%s270_s1 + $0x8] sm:$0xff] }
   0x2   :  { %96 = vmatpush.bf16.msra.mxu0 %v177_v0  ;;  %178 = vmatpush.bf16.msra.mxu1 %v177_v0  ;;  %v174_v3 = vld [vmem:[%s270_s1] sm:$0xff]  ;;  %v171_v5 = vld [vmem:[%s272_s0 + $0x8] sm:$0xff]  ;;  %v172_v6 = vld [vmem:[%s272_s0 + $0x10] sm:$0xff] }
   0x3   :  { %179 = vmatpush.bf16.msra.mxu2 %v177_v0  ;;  %180 = vmatpush.bf16.msra.mxu3 %v177_v0  ;;  %v170_v4 = vld [vmem:[%s272_s0] sm:$0xff]  ;;  %v173_v7 = vld [vmem:[%s272_s0 + $0x18] sm:$0xff] }
   0x4   :  { %v190_v8 = vld [vmem:[%s271_s2] ss:$0 sm:$0xff] }
   0x6   :  { %97 = vmatpush.bf16.msra.mxu0 %v176_v1  ;;  %181 = vmatpush.bf16.msra.mxu1 %v176_v1 }
   0x7   :  { %182 = vmatpush.bf16.msra.mxu2 %v176_v1  ;;  %183 = vmatpush.bf16.msra.mxu3 %v176_v1 }
   0xa   :  { %98 = vmatpush.bf16.msra.mxu0 %v175_v2  ;;  %184 = vmatpush.bf16.msra.mxu1 %v175_v2 }
   0xb   :  { %185 = vmatpush.bf16.msra.mxu2 %v175_v2  ;;  %186 = vmatpush.bf16.msra.mxu3 %v175_v2 }
   0xe   :  { %99 = vmatpush.bf16.msra.mxu0 %v174_v3  ;;  %187 = vmatpush.bf16.msra.mxu1 %v174_v3 }
   0xf   :  { %188 = vmatpush.bf16.msra.mxu2 %v174_v3  ;;  %189 = vmatpush.bf16.msra.mxu3 %v174_v3 }
  0x11   :  { %166 = vmatmul.msk.bf16.vlgmr.msra.gmra.mxu0 %vm79_vm0, %v170_v4  ;;  %167 = vmatmul.msk.bf16.vlgmr.msra.gmra.mxu1 %vm79_vm0, %v171_v5 }
  0x12   :  { %168 = vmatmul.msk.bf16.vlgmr.msra.gmra.mxu2 %vm79_vm0, %v172_v6  ;;  %169 = vmatmul.msk.bf16.vlgmr.msra.gmra.mxu3 %vm79_vm0, %v173_v7 }
  0x8e   :  { %v101_v9 = vpop.f32.mrf.mxu0  ;;  %v106_v10 = vpop.f32.mrf.mxu1 }
  0x8f   :  { %v102_v11 = vadd.f32 %v190_v8, %v101_v9  ;;  %v107_v12 = vadd.f32 %v190_v8, %v106_v10 }
  0x91   :  { %122 = vst.msk [vmem:[%s273_s3] sm:$0xff] %vm121_vm1, %v102_v11 }
  0x92   :  { %124 = vst.msk [vmem:[%s273_s3 + $0x10] sm:$0xff] %vm121_vm1, %v107_v12 }
  0x95   :  { %v111_v13 = vpop.f32.mrf.mxu2  ;;  %v116_v14 = vpop.f32.mrf.mxu3 }
  0x96   :  { %v112_v15 = vadd.f32 %v190_v8, %v111_v13  ;;  %v117_v16 = vadd.f32 %v190_v8, %v116_v14  ;;  %v103_v17 = vpop.f32.mrf.mxu0  ;;  %v108_v18 = vpop.f32.mrf.mxu1 }
  0x97   :  { %v104_v19 = vadd.f32 %v190_v8, %v103_v17  ;;  %v109_v20 = vadd.f32 %v190_v8, %v108_v18 }
  0x98   :  { %126 = vst.msk [vmem:[%s273_s3 + $0x20] sm:$0xff] %vm121_vm1, %v112_v15 }
  0x99   :  { %128 = vst.msk [vmem:[%s273_s3 + $0x30] sm:$0xff] %vm121_vm1, %v117_v16 }
  0x9a   :  { %123 = vst.msk [vmem:[%s273_s3 + $0x8] sm:$0xff] %vm121_vm1, %v104_v19 }
  0x9b   :  { %125 = vst.msk [vmem:[%s273_s3 + $0x18] sm:$0xff] %vm121_vm1, %v109_v20 }
  0x9d   :  { %v113_v21 = vpop.f32.mrf.mxu2  ;;  %v118_v22 = vpop.f32.mrf.mxu3 }
  0x9e   :  { %v114_v23 = vadd.f32 %v190_v8, %v113_v21  ;;  %v119_v24 = vadd.f32 %v190_v8, %v118_v22 }
  0xa0   :  { %127 = vst.msk [vmem:[%s273_s3 + $0x28] sm:$0xff] %vm121_vm1, %v114_v23 }
  0xa1   :  { %129 = vst.msk [vmem:[%s273_s3 + $0x38] sm:$0xff] %vm121_vm1, %v119_v24 }

</bundles_post_ra>
